<compile_context>
chip_gen: v5e
topology: v5e:2x2
jax: 0.10.0
libtpu: 0.0.40
codegen_flags: <defaults>
</compile_context>

<pallas_src>
import jax
import jax.numpy as jnp
from jax.experimental import pallas as pl
from jax.experimental.pallas import tpu as pltpu

# Small, deterministic problem sizes consistent with the module.
B, C, H, W = 2, 4, 16, 16
K = 3                          # conv kernel size of the synthetic patchD


def _patch_agg_kernel(obs_ref, w_ref, b_ref, o_ref):
    """obs_ref: (B, C*H*W) f32 VMEM  -- flattened NCHW observation
       w_ref:   (1, C*H*W) f32 VMEM  -- per-pixel coverage weights (already / P)
       b_ref:   (1,)       f32 SMEM  -- conv bias (scalar)
       o_ref:   (B, 2)     f32 VMEM  -- [sigmoid(mean), 1 - sigmoid(mean)]
    """
    bias = b_ref[0]                                           # scalar from SMEM

    # mean over patches of the conv logits = <obs, W_eff> + bias  (per sample).
    s = jnp.sum(obs_ref[...] * w_ref[...], axis=1, keepdims=True) + bias  # (B,1)

    # Exact sigmoid (EUP exp + exact divide).
    p = 1.0 / (1.0 + jnp.exp(-s))                             # (B, 1)

    # Single fused store of both probability columns.
    o_ref[...] = jnp.concatenate([p, 1.0 - p], axis=1)        # (B, 2)


def _build_coverage_map(w, h, wdt, k):
    """w: (1, C, K, K) OIHW.  Returns (1, C*H*W) f32 map with the 1/P mean
    folded in:  W_eff[c,hh,ww] = (1/P) * sum_{taps covering (hh,ww)} w[0,c,kh,kw]."""
    c = w.shape[1]
    ho, wo = h - k + 1, wdt - k + 1
    num_patches = ho * wo
    w_eff = jnp.zeros((c, h, wdt), jnp.float32)
    for kh in range(k):
        for kw in range(k):
            w_eff = w_eff.at[:, kh:kh + ho, kw:kw + wo].add(
                w[0, :, kh, kw].astype(jnp.float32)[:, None, None])
    return (w_eff * (1.0 / num_patches)).reshape(1, c * h * wdt)


def patch_aggregator(obs, w, b):
    """obs: (B, C, H, W) f32; w: (1, C, K, K) OIHW (O must be 1); b: (1,).
    Returns (B, 2) = [sigmoid(mean_logit), 1 - sigmoid(mean_logit)]."""
    Bn, Cn, Hn, Wn = obs.shape
    assert w.shape[0] == 1, "synthetic patchD must have a single output channel"

    # Host-side glue: lane-dense flatten of obs (pure row-major reshape of
    # NCHW, no transpose) and the per-pixel coverage-weight map.
    obs2d = obs.astype(jnp.float32).reshape(Bn, Cn * Hn * Wn)
    w_eff = _build_coverage_map(w, Hn, Wn, K)
    b_arr = b.reshape(1).astype(jnp.float32)

    return pl.pallas_call(
        _patch_agg_kernel,
        out_shape=jax.ShapeDtypeStruct((Bn, 2), jnp.float32),
        # No grid: single invocation, whole arrays resident (everything is a
        # few KB).  Bias goes to SMEM (scalar path) instead of a padded VMEM
        # tile + DMA.
        in_specs=[
            pl.BlockSpec(memory_space=pltpu.MemorySpace.VMEM),   # obs (B, CHW)
            pl.BlockSpec(memory_space=pltpu.MemorySpace.VMEM),   # coverage map
            pl.BlockSpec(memory_space=pltpu.MemorySpace.SMEM),   # bias
        ],
        out_specs=pl.BlockSpec(memory_space=pltpu.MemorySpace.VMEM),
        # Advisory hint so XLA schedules neighbors around this tiny call.
        cost_estimate=pl.CostEstimate(
            flops=2 * Bn * Cn * Hn * Wn,
            transcendentals=Bn,
            bytes_accessed=4 * (Bn + 1) * Cn * Hn * Wn,
        ),
    )(obs2d, w_eff, b_arr)
    # TODO(synk): at realistic PatchAIL batch sizes, grid over B with
    # dimension_semantics=("parallel",) and move the contraction to the MXU.


def reference(obs, w, b):
    """Pure-JAX reference of Patch_aggregator(patchD).forward(obs)."""
    logits = jax.lax.conv_general_dilated(
        obs, w, window_strides=(1, 1), padding="VALID",
        dimension_numbers=("NCHW", "OIHW", "NCHW"))
    logits = logits + b.reshape(1, -1, 1, 1)
    flat = logits.reshape(logits.shape[0], -1)
    s = jnp.mean(flat, axis=1)
    p = jax.nn.sigmoid(s)[:, None]
    return jnp.concatenate([p, 1.0 - p], axis=1)


if __name__ == "__main__":
    key = jax.random.PRNGKey(0)
    k_obs, k_w, k_b = jax.random.split(key, 3)

    obs = jax.random.normal(k_obs, (B, C, H, W), dtype=jnp.float32)
    # Deterministic synthetic patchD parameters (Conv2d(C, 1, 3) weight/bias).
    w = 0.1 * jax.random.normal(k_w, (1, C, K, K), dtype=jnp.float32)
    b = 0.05 * jax.random.normal(k_b, (1,), dtype=jnp.float32)

    out = jax.block_until_ready(patch_aggregator(obs, w, b))
    ref = jax.block_until_ready(reference(obs, w, b))

    assert out.shape == (B, 2), out.shape
    # Exact sigmoid now -> tight tolerance (only fp summation-order noise).
    assert jnp.allclose(out, ref, atol=1e-5, rtol=1e-5), (out, ref)
    # rows must sum to 1 (probs of [expert, agent])
    assert jnp.allclose(out.sum(axis=1), jnp.ones((B,)), atol=1e-6)
    print("KERNEL_OK")
</pallas_src>

<mosaic_0001>
module attributes {stable_mosaic.version = 11 : i64} {
  func.func @_patch_agg_kernel(%arg0: memref<2x1024xf32, #tpu.memory_space<vmem>>, %arg1: memref<1x1024xf32, #tpu.memory_space<vmem>>, %arg2: memref<1xf32, #tpu.memory_space<smem>>, %arg3: memref<2x2xf32, #tpu.memory_space<vmem>>) attributes {dimension_semantics = [], scalar_prefetch = 0 : i64, scratch_operands = 0 : i64, tpu.core_type = #tpu.core_type<tc>} {
    %c0 = arith.constant 0 : index
    %0 = memref.load %arg2[%c0] : memref<1xf32, #tpu.memory_space<smem>>
    %c0_0 = arith.constant 0 : index
    %c0_1 = arith.constant 0 : index
    %1 = vector.load %arg0[%c0_0, %c0_1] : memref<2x1024xf32, #tpu.memory_space<vmem>>, vector<2x1024xf32>
    %c0_2 = arith.constant 0 : index
    %c0_3 = arith.constant 0 : index
    %2 = vector.load %arg1[%c0_2, %c0_3] : memref<1x1024xf32, #tpu.memory_space<vmem>>, vector<1x1024xf32>
    %3 = vector.broadcast %2 : vector<1x1024xf32> to vector<2x1024xf32>
    %4 = arith.mulf %1, %3 : vector<2x1024xf32>
    %cst = arith.constant dense<0.000000e+00> : vector<2xf32>
    %5 = vector.multi_reduction <add>, %4, %cst [1] : vector<2x1024xf32> to vector<2xf32>
    %6 = vector.shape_cast %5 : vector<2xf32> to vector<2x1xf32>
    %7 = vector.broadcast %0 : f32 to vector<2x1xf32>
    %8 = arith.addf %6, %7 : vector<2x1xf32>
    %cst_4 = arith.constant 0.000000e+00 : f32
    %9 = vector.broadcast %cst_4 : f32 to vector<2x1xf32>
    %10 = arith.subf %9, %8 : vector<2x1xf32>
    %11 = math.exp %10 : vector<2x1xf32>
    %cst_5 = arith.constant 1.000000e+00 : f32
    %12 = vector.broadcast %cst_5 : f32 to vector<2x1xf32>
    %13 = arith.addf %12, %11 : vector<2x1xf32>
    %cst_6 = arith.constant 1.000000e+00 : f32
    %14 = vector.broadcast %cst_6 : f32 to vector<2x1xf32>
    %15 = arith.divf %14, %13 : vector<2x1xf32>
    %cst_7 = arith.constant 1.000000e+00 : f32
    %16 = vector.broadcast %cst_7 : f32 to vector<2x1xf32>
    %17 = arith.subf %16, %15 : vector<2x1xf32>
    %18 = tpu.concatenate %15, %17 in 1 : vector<2x1xf32>, vector<2x1xf32> -> vector<2x2xf32>
    %c0_8 = arith.constant 0 : index
    %c0_9 = arith.constant 0 : index
    %19 = vector.load %arg3[%c0_8, %c0_9] : memref<2x2xf32, #tpu.memory_space<vmem>>, vector<2x2xf32>
    tpu.vector_store %arg3[%c0_8, %c0_9], %18 {strides = array<i32>} : memref<2x2xf32, #tpu.memory_space<vmem>>, vector<2x2xf32>,
    return
  }
}

</mosaic_0001>

<bundles_post_ra>
// kernel: tpu_custom_call.1
= control target key start
LH: loop header
LB: loop body
LE: loop exit
PB: predicated region body
PF: predicated region fallthrough
CT: control target
= control target key end

     0   :  { %9 = vsyncpa [#allocation4], 0  ;;  %s290_s0 = inlined_call_operand.hbm [shape: f32[2,1024], index: 0, kind: input, shape index: {}]   ;;  %s291_s1 = inlined_call_operand.hbm [shape: f32[1,1024], index: 1, kind: input, shape index: {}]   ;;  %s292_s2 = inlined_call_operand.<no memory space> [shape: f32[1], index: 2, kind: input, shape index: {}]   ;;  %s293_s3 = inlined_call_operand.hbm [shape: f32[2,2], index: 3, kind: output, shape index: {}]  }
   0x1   :  { %10 = vsyncpa [#allocation7], 0 }
   0x2   :  { %11 = vsyncpa [#allocation5], 0  ;;  %s17_s14 = sshll.u32 %s290_s0, 4  ;;  %s243_s15 = smov [#allocation3]   ;;  %s18_s14 = int_to_ptr.hbm [resolvable:$true] %s17_s14 }
   0x3   :  { %s19_s16 = sshll.u32 %s243_s15, 4  ;;  %s28_s19 = sshll.u32 %s291_s1, 4  ;;  %s20_s16 = int_to_ptr.vmem [resolvable:$true] %s19_s16  ;;  %s29_s19 = int_to_ptr.hbm [resolvable:$true] %s28_s19 }
   0x4   :  { %22 = dma.hbm_to_vmem [thread:$0]  %s18_s14, 256, %s20_s16, [#allocation4]  }
   0x5   :  { %s244_s20 = smov [#allocation6]  }
   0x6   :  { %s30_s21 = sshll.u32 %s244_s20, 4  ;;  %s31_s21 = int_to_ptr.vmem [resolvable:$true] %s30_s21 }
   0x7   :  { %33 = dma.hbm_to_vmem [thread:$0]  %s29_s19, 128, %s31_s21, [#allocation7]  }
   0x8   :  { %237 = dma.done.wait [#allocation4], 256  }
   0x9   :  { %238 = vsyncadd [#allocation4], 4294967040 }
   0xa   :  { %239 = dma.done.wait [#allocation7], 128  }
   0xb   :  { %240 = vsyncadd [#allocation7], 4294967168  ;;  %v47_v0 = vld [vmem:[#allocation6] sm:$0xff]  ;;  %vm63_vm0 = vcmask 1041408   ;;  %vm65_vm1 = vcmask 1045508   ;;  %vm67_vm2 = vcmask 1043456   ;;  %v114_v48 = vstv %s292_s2 }
   0xc   :  { %v49_v1 = vperm.slane %v47_v0, 0  ;;  %v50_v2 = vperm.slane %v47_v0, 1  ;;  %v51_v3 = vperm.slane %v47_v0, 2  ;;  %v52_v4 = vperm.slane %v47_v0, 3  ;;  %v45_v12 = vld [vmem:[#allocation3] sm:$0xff]  ;;  %v46_v16 = vld [vmem:[#allocation3 + $0x8] sm:$0xff] }
   0xd   :  { %v53_v5 = vperm.slane %v47_v0, 4  ;;  %v54_v6 = vperm.slane %v47_v0, 5  ;;  %v55_v7 = vperm.slane %v47_v0, 6  ;;  %v56_v8 = vperm.slane %v47_v0, 7  ;;  %s245_s2 = smov [#allocation8]   ;;  %s147_s25 = sshll.u32 %s293_s3, 4  ;;  %s148_s25 = int_to_ptr.hbm [resolvable:$true] %s147_s25 }
   0xe   :  { %v57_v9 = vrot.slane %v50_v2, 6  ;;  %v58_v10 = vrot.slane %v51_v3, 4  ;;  %v59_v11 = vrot.slane %v52_v4, 2  ;;  %s145_s22 = sshll.u32 %s245_s2, 4  ;;  %vm136_vm7 = vcmask 7168   ;;  %s146_s22 = int_to_ptr.vmem [resolvable:$true] %s145_s22 }
   0xf   :  { %v60_v13 = vrot.slane %v54_v6, 6  ;;  %v61_v14 = vrot.slane %v55_v7, 4  ;;  %v62_v15 = vrot.slane %v56_v8, 2  ;;  %vm138_vm8 = vcmask 9216  }
  0x10   :  { %v64_v17 = vsel %vm63_vm0, %v49_v1, %v57_v9  ;;  %v66_v18 = vsel %vm65_vm1, %v58_v10, %v59_v11 }
  0x11   :  { %v68_v19 = vsel %vm67_vm2, %v64_v17, %v66_v18  ;;  %v69_v20 = vsel %vm63_vm0, %v53_v5, %v60_v13  ;;  %v70_v21 = vsel %vm65_vm1, %v61_v14, %v62_v15 }
  0x12   :  { %v71_v22 = vsel %vm67_vm2, %v69_v20, %v70_v21  ;;  %v74_v23 = vmul.f32 %v68_v19, %v45_v12 }
  0x13   :  { %v75_v24 = vmul.f32 %v71_v22, %v46_v16 }
  0x14   :  { %78 = vst [vmem:[#allocation1] ss:$4 sm:$0xff] %v74_v23 }
  0x15   :  { %80 = vst [vmem:[#allocation1 + $0x20] ss:$4 sm:$0xff] %v75_v24 }
  0x1b   :  { %v81_v25 = vld.sshfl [vmem:[#allocation1] sm:$0xff pattern:$0x73625140]  ;;  %v82_v26 = vld.sshfl [vmem:[#allocation1 + $0x8] sm:$0xff pattern:$0x73625140] }
  0x1c   :  { %v83_v27 = vld.sshfl [vmem:[#allocation1 + $0x10] sm:$0xff pattern:$0x73625140]  ;;  %v84_v28 = vld.sshfl [vmem:[#allocation1 + $0x18] sm:$0xff pattern:$0x73625140] }
  0x1d   :  { %v97_v29 = vsel %vm63_vm0, %v81_v25, 0.0  ;;  %v98_v30 = vsel %vm63_vm0, %v82_v26, 0.0  ;;  %v100_v31 = vsel %vm63_vm0, %v83_v27, 0.0  ;;  %v85_v32 = vld.sshfl [vmem:[#allocation1 + $0x20] sm:$0xff pattern:$0x73625140] }
  0x1e   :  { %v99_v33 = vadd.f32 %v98_v30, %v97_v29  ;;  %v102_v34 = vsel %vm63_vm0, %v84_v28, 0.0  ;;  %v86_v35 = vld.sshfl [vmem:[#allocation1 + $0x28] sm:$0xff pattern:$0x73625140]  ;;  %v104_v37 = vsel %vm63_vm0, %v85_v32, 0.0 }
  0x1f   :  { %v87_v38 = vld.sshfl [vmem:[#allocation1 + $0x30] sm:$0xff pattern:$0x73625140]  ;;  %v106_v40 = vsel %vm63_vm0, %v86_v35, 0.0 }
  0x20   :  { %v101_v36 = vadd.f32 %v100_v31, %v99_v33  ;;  %v88_v41 = vld.sshfl [vmem:[#allocation1 + $0x38] sm:$0xff pattern:$0x73625140]  ;;  %v108_v43 = vsel %vm63_vm0, %v87_v38, 0.0 }
  0x21   :  { %v110_v45 = vsel %vm63_vm0, %v88_v41, 0.0 }
  0x22   :  { %v103_v39 = vadd.f32 %v102_v34, %v101_v36 }
  0x24   :  { %v105_v42 = vadd.f32 %v104_v37, %v103_v39 }
  0x26   :  { %v107_v44 = vadd.f32 %v106_v40, %v105_v42 }
  0x28   :  { %v109_v46 = vadd.f32 %v108_v43, %v107_v44 }
  0x2a   :  { %v111_v47 = vadd.f32 %v110_v45, %v109_v46 }
  0x2c   :  { %112 = vadd.xlane.f32.xlu0 %v111_v47 }
  0x9f   :  { %v113_v49 = vpop.xlane.xlu0 %112 }
  0xa0   :  { %v115_v50 = vadd.f32 %v114_v48, %v113_v49 }
  0xa2   :  { %v116_v51 = vsub.f32 0.0, %v115_v50 }
  0xa4   :  { %v117_v52 = vmul.f32 1.442695, %v116_v51 }
  0xa6   :  { %161 = vpow2.f32 %v117_v52 }
  0xac   :  { %v162_v53 = vpop.eup %161 }
  0xad   :  { %v119_v54 = vadd.f32 1.0, %v162_v53 }
  0xaf   :  { %163 = vrcp.f32 %v119_v54  ;;  %v131_v58 = vand.u32 2147483648, %v119_v54  ;;  %v129_v60 = vand.u32 2147483647, %v119_v54  ;;  %vm125_vm4 = vweird.f32 %v119_v54 }
  0xb1   :  { %v132_v62 = vor.u32 1.1754944e-38, %v131_v58  ;;  %vm130_vm6 = vcmp.eq.f32.partialorder %v129_v60, 8.507059e+37 }
  0xb5   :  { %v164_v55 = vpop.eup %163 }
  0xb6   :  { %v121_v56 = vmul.f32 %v164_v55, %v119_v54  ;;  %vm126_vm3 = vweird.f32 %v164_v55 }
  0xb7   :  { %vm127_vm5 = vmor %vm125_vm4, %vm126_vm3 }
  0xb8   :  { %v122_v57 = vsub.f32 1.0, %v121_v56 }
  0xba   :  { %v123_v59 = vmul.f32 %v164_v55, %v122_v57 }
  0xbc   :  { %v124_v61 = vadd.f32 %v164_v55, %v123_v59 }
  0xbe   :  { %v128_v63 = vsel %vm127_vm5, %v164_v55, %v124_v61 }
  0xbf   :  { %v133_v0 = vsel %vm130_vm6, %v132_v62, %v128_v63 }
  0xc0   :  { %v135_v1 = vsub.f32 1.0, %v133_v0 }
  0xc2   :  { %v137_v2 = vsel %vm136_vm7, %v133_v0, %v135_v1 }
  0xc3   :  { %139 = vst.msk [vmem:[#allocation8] sm:$0x3] %vm138_vm8, %v137_v2 }
  0xc4   :  { %150 = dma.vmem_to_hbm [thread:$0]  %s146_s22, 32, %s148_s25, [#allocation5]  }
  0xc5   :  { %241 = dma.done.wait [#allocation5], 32  }
  0xc6   :  { %242 = vsyncadd [#allocation5], 4294967264 }
  0xc7   :  { %155 = vsyncpa [#allocation4], 1 }
  0xc8   :  { %156 = vsyncpa [#allocation7], 1 }
  0xc9   :  { %157 = vsyncpa [#allocation5], 1 }

</bundles_post_ra>
